<compile_context>
chip_gen: v6e
topology: v6e:2x2x1
jax: 0.10.0
libtpu: 0.0.40
codegen_flags: <defaults>
</compile_context>

<pallas_src>
import math

import jax
import jax.numpy as jnp
from jax import lax
from jax.experimental import pallas as pl
from jax.experimental.pallas import tpu as pltpu


def _round_up(x, m):
    return (x + m - 1) // m * m


def _sublane_align(dtype):
    # f32 -> 8, bf16 -> 16, int8/fp8 -> 32 (sub-32-bit dtypes pack sublanes).
    return max(8, 32 // jnp.dtype(dtype).itemsize)


def _balanced_tile(dim, tile_max, align):
    """Smallest aligned tile that covers `dim` in ceil(dim/tile_max) steps."""
    dim_a = _round_up(max(int(dim), 1), align)
    tile_max = max(_round_up(int(tile_max), align), align)
    if dim_a <= tile_max:
        return dim_a
    n_tiles = math.ceil(dim_a / tile_max)
    return _round_up(math.ceil(dim_a / n_tiles), align)


def _make_kernels(ws_eff, bs_eff, neg_slope, use_lrelu, mxu_dtype):
    ws_eff = float(ws_eff)
    bs_eff = float(bs_eff)
    neg_slope = float(neg_slope)

    def _dot(x, w):
        # x: (tm, tk), w: (tn, tk) -- contract last dims => (tm, tn).
        if mxu_dtype is not None:
            x = x.astype(mxu_dtype)
            w = w.astype(mxu_dtype)
        return lax.dot_general(x, w, (((1,), (1,)), ((), ())),
                               preferred_element_type=jnp.float32)

    def _epilogue(acc, b, o_ref):
        # act_scale is pre-folded into ws_eff / bs_eff (sign-preserving, so the
        # leaky-relu select commutes with the scale).
        z = acc * ws_eff + b.astype(jnp.float32) * bs_eff
        if use_lrelu:
            z = jnp.where(z >= 0.0, z, neg_slope * z)
        o_ref[...] = z.astype(o_ref.dtype)

    # Specialized kernel: K fits in one tile -> no accumulator scratch.
    def kernel_single_k(x_ref, w_ref, b_ref, o_ref):
        _epilogue(_dot(x_ref[...], w_ref[...]), b_ref[...], o_ref)

    # General kernel: K (reduction) is the innermost grid axis.
    def kernel_multi_k(x_ref, w_ref, b_ref, o_ref, acc_ref):
        k = pl.program_id(2)

        @pl.when(k == 0)
        def _():
            acc_ref[...] = jnp.zeros_like(acc_ref)

        acc_ref[...] += _dot(x_ref[...], w_ref[...])

        @pl.when(k == pl.num_programs(2) - 1)
        def _():
            _epilogue(acc_ref[...], b_ref[...], o_ref)

    return kernel_single_k, kernel_multi_k


def dense_block_pallas(x, weight, bias, *, wscale, bscale,
                       activation_type="lrelu",
                       mxu_dtype=jnp.bfloat16,
                       tm=256, tn=512, tk=1024,
                       vmem_budget_bytes=24 * 1024 * 1024):
    """Forward pass of DenseBlock.

    x:      (M, K) or any (M, ...) tensor (flattened to 2-D like the module).
    weight: (N, K)  -- native PyTorch layout, streamed untransposed.
    bias:   (N,) or None.
    mxu_dtype: dtype fed to the MXU (None => use operand dtype, exact f32).
    """
    if x.ndim != 2:
        x = x.reshape(x.shape[0], -1)
    M, K = x.shape
    N, K_w = weight.shape
    assert K == K_w, (K, K_w)

    if activation_type == "lrelu":
        use_lrelu, act_scale = True, math.sqrt(2.0)
    elif activation_type == "linear":
        use_lrelu, act_scale = False, 1.0
    else:
        raise NotImplementedError(activation_type)

    if bias is None:
        bias = jnp.zeros((N,), dtype=jnp.float32)
        bscale = 0.0

    ws_eff = float(wscale) * act_scale
    bs_eff = float(bscale) * act_scale

    x_item = jnp.dtype(x.dtype).itemsize
    w_item = jnp.dtype(weight.dtype).itemsize
    b_item = jnp.dtype(bias.dtype).itemsize
    o_item = x_item

    # Balanced, alignment-aware tiles.
    m_align = _sublane_align(x.dtype)
    tm = _balanced_tile(M, tm, m_align)
    tn = _balanced_tile(N, tn, 128)
    tk = _balanced_tile(K, tk, 128)

    Ka = _round_up(K, 128)

    def _vmem_bytes(tm_, tn_, tk_):
        multi_k = tk_ < Ka
        return (2 * tm_ * tk_ * x_item + 2 * tn_ * tk_ * w_item
                + 2 * tn_ * b_item + 2 * tm_ * tn_ * o_item
                + (tm_ * tn_ * 4 if multi_k else 0))

    # Clamp double-buffered working set (keeps v7x's smaller VMEM safe).
    while _vmem_bytes(tm, tn, tk) > vmem_budget_bytes and tk > 128:
        tk = max(128, _round_up(tk // 2, 128))
    while _vmem_bytes(tm, tn, tk) > vmem_budget_bytes and tn > 128:
        tn = max(128, _round_up(tn // 2, 128))

    Mp = _round_up(_round_up(M, m_align), tm)
    Np = _round_up(_round_up(N, 128), tn)
    Kp = _round_up(Ka, tk)
    grid_m, grid_n, grid_k = Mp // tm, Np // tn, Kp // tk

    # Megacore: when M collapses to a single tile, make sure the N axis has
    # >= 2 tiles (only if it costs no extra padding) so both v7x TCs get work.
    if grid_m == 1 and grid_n == 1:
        Na = _round_up(N, 128)
        if Na >= 256 and Na % 256 == 0:
            tn = Na // 2
            Np = Na
            grid_n = 2

    # Pad only when actually needed (avoids extra HBM passes).
    x_p = x if (Mp == M and Kp == K) else jnp.pad(x, ((0, Mp - M), (0, Kp - K)))
    w_p = weight if (Np == N and Kp == K) else jnp.pad(
        weight, ((0, Np - N), (0, Kp - K)))
    b_p = bias if Np == N else jnp.pad(bias, (0, Np - N))
    b_p = b_p.reshape(1, Np)

    kernel_single_k, kernel_multi_k = _make_kernels(
        ws_eff, bs_eff, 0.2, use_lrelu, mxu_dtype)

    cost = pl.CostEstimate(
        flops=2 * M * N * K,
        transcendentals=0,
        bytes_accessed=(M * K * x_item + N * K * w_item
                        + N * b_item + M * N * o_item))

    if grid_k == 1:
        grid = (grid_m, grid_n)
        in_specs = [
            pl.BlockSpec((tm, tk), lambda i, j: (i, 0)),   # x tile
            pl.BlockSpec((tn, tk), lambda i, j: (j, 0)),   # W tile (native N,K)
            pl.BlockSpec((1, tn), lambda i, j: (0, j)),    # bias tile
        ]
        out_specs = pl.BlockSpec((tm, tn), lambda i, j: (i, j))
        scratch_shapes = []
        kernel = kernel_single_k
        dims = ("parallel", "parallel")
    else:
        grid = (grid_m, grid_n, grid_k)
        in_specs = [
            pl.BlockSpec((tm, tk), lambda i, j, k: (i, k)),
            pl.BlockSpec((tn, tk), lambda i, j, k: (j, k)),
            pl.BlockSpec((1, tn), lambda i, j, k: (0, j)),
        ]
        out_specs = pl.BlockSpec((tm, tn), lambda i, j, k: (i, j))
        scratch_shapes = [pltpu.VMEM((tm, tn), jnp.float32)]
        kernel = kernel_multi_k
        dims = ("parallel", "parallel", "arbitrary")

    out = pl.pallas_call(
        kernel,
        out_shape=jax.ShapeDtypeStruct((Mp, Np), x.dtype),
        grid_spec=pltpu.PrefetchScalarGridSpec(
            num_scalar_prefetch=0,
            grid=grid,
            in_specs=in_specs,
            out_specs=out_specs,
            scratch_shapes=scratch_shapes),
        compiler_params=pltpu.CompilerParams(dimension_semantics=dims),
        cost_estimate=cost,
    )(x_p, w_p, b_p)

    if Mp == M and Np == N:
        return out
    return out[:M, :N]


def dense_block_ref(x, weight, bias, *, wscale, bscale,
                    activation_type="lrelu", mxu_dtype=None):
    """Pure-JAX reference mirroring the PyTorch module (optionally with the
    same bf16-operand / f32-accumulate matmul precision as the kernel)."""
    if x.ndim != 2:
        x = x.reshape(x.shape[0], -1)
    if mxu_dtype is not None:
        xm, wm = x.astype(mxu_dtype), weight.astype(mxu_dtype)
    else:
        xm, wm = x.astype(jnp.float32), weight.astype(jnp.float32)
    y = lax.dot_general(xm, wm, (((1,), (1,)), ((), ())),
                        preferred_element_type=jnp.float32)
    y = y * wscale
    if bias is not None:
        y = y + bias.astype(jnp.float32) * bscale
    if activation_type == "lrelu":
        y = jnp.where(y >= 0.0, y, 0.2 * y) * math.sqrt(2.0)
    return y.astype(x.dtype)


if __name__ == "__main__":
    key = jax.random.PRNGKey(0)
    k1, k2, k3 = jax.random.split(key, 3)

    # ---- Test 1: StyleGAN2-ADA discriminator head style shape -------------
    # DenseBlock(in_channels=1024, out_channels=256), lrelu, applied to a 4-D
    # activation (batch=2, 4 channels, 16x16 spatial) -> flattened to (2,1024).
    batch, c, h, w_sp = 2, 4, 16, 16
    in_channels = c * h * w_sp            # 1024
    out_channels = 256
    lr_mul = 1.0
    wscale = (1.0 / math.sqrt(in_channels)) * lr_mul   # use_wscale=True
    bscale = lr_mul

    x = jax.random.normal(k1, (batch, c, h, w_sp), dtype=jnp.float32)
    weight = jax.random.normal(k2, (out_channels, in_channels),
                               dtype=jnp.float32) / lr_mul
    bias = 0.1 * jax.random.normal(k3, (out_channels,), dtype=jnp.float32)

    out = jax.block_until_ready(
        dense_block_pallas(x, weight, bias, wscale=wscale, bscale=bscale,
                           activation_type="lrelu"))
    ref = dense_block_ref(x, weight, bias, wscale=wscale, bscale=bscale,
                          activation_type="lrelu", mxu_dtype=jnp.bfloat16)
    assert out.shape == ref.shape == (batch, out_channels), out.shape
    assert jnp.allclose(out, ref, atol=2e-3, rtol=2e-3), "mismatch (test 1)"

    # ---- Test 2: 'linear' activation, exact f32 MXU path, multi-K grid ----
    # Odd shapes exercise padding, balanced tiles and the K-accumulator.
    M2, K2, N2 = 20, 640, 384
    x2 = jax.random.normal(k1, (M2, K2), dtype=jnp.float32)
    w2 = jax.random.normal(k2, (N2, K2), dtype=jnp.float32)
    b2 = jax.random.normal(k3, (N2,), dtype=jnp.float32)
    ws2 = 1.0 / math.sqrt(K2)
    out2 = jax.block_until_ready(
        dense_block_pallas(x2, w2, b2, wscale=ws2, bscale=1.0,
                           activation_type="linear", mxu_dtype=None, tk=256))
    ref2 = dense_block_ref(x2, w2, b2, wscale=ws2, bscale=1.0,
                           activation_type="linear")
    assert out2.shape == ref2.shape == (M2, N2), out2.shape
    assert jnp.allclose(out2, ref2, atol=1e-4, rtol=1e-4), "mismatch (test 2)"

    # ---- Test 3: bf16 activations + bf16 weights streamed from HBM --------
    M3, K3, N3 = 4, 512, 256
    x3 = jax.random.normal(k1, (M3, K3), dtype=jnp.bfloat16)
    w3 = jax.random.normal(k2, (N3, K3), dtype=jnp.bfloat16)
    b3 = (0.1 * jax.random.normal(k3, (N3,))).astype(jnp.bfloat16)
    ws3 = 1.0 / math.sqrt(K3)
    out3 = jax.block_until_ready(
        dense_block_pallas(x3, w3, b3, wscale=ws3, bscale=1.0,
                           activation_type="lrelu"))
    ref3 = dense_block_ref(x3, w3, b3, wscale=ws3, bscale=1.0,
                           activation_type="lrelu", mxu_dtype=jnp.bfloat16)
    assert out3.shape == ref3.shape == (M3, N3), out3.shape
    assert jnp.allclose(out3.astype(jnp.float32), ref3.astype(jnp.float32),
                        atol=2e-2, rtol=2e-2), "mismatch (test 3)"

    print("KERNEL_OK")
</pallas_src>

<mosaic_0001>
module attributes {stable_mosaic.version = 11 : i64} {
  func.func @kernel_single_k(%arg0: i32, %arg1: i32, %arg2: memref<8x1024xf32, #tpu.memory_space<vmem>>, %arg3: memref<128x1024xf32, #tpu.memory_space<vmem>>, %arg4: memref<1x128xf32, #tpu.memory_space<vmem>>, %arg5: memref<8x128xf32, #tpu.memory_space<vmem>>) attributes {dimension_semantics = [#tpu.dimension_semantics<parallel>, #tpu.dimension_semantics<parallel>], iteration_bounds = array<i64: 1, 2>, scalar_prefetch = 0 : i64, scratch_operands = 0 : i64, tpu.core_type = #tpu.core_type<tc>, window_params = [{transform_indices = @transform_0, window_bounds = array<i64: 8, 1024>}, {transform_indices = @transform_1, window_bounds = array<i64: 128, 1024>}, {transform_indices = @transform_2, window_bounds = array<i64: 1, 128>}, {transform_indices = @transform_3, window_bounds = array<i64: 8, 128>}]} {
    %c0 = arith.constant 0 : index
    %c0_0 = arith.constant 0 : index
    %0 = vector.load %arg2[%c0, %c0_0] : memref<8x1024xf32, #tpu.memory_space<vmem>>, vector<8x1024xf32>
    %c0_1 = arith.constant 0 : index
    %c0_2 = arith.constant 0 : index
    %1 = vector.load %arg3[%c0_1, %c0_2] : memref<128x1024xf32, #tpu.memory_space<vmem>>, vector<128x1024xf32>
    %2 = arith.truncf %0 : vector<8x1024xf32> to vector<8x1024xbf16>
    %3 = arith.truncf %1 : vector<128x1024xf32> to vector<128x1024xbf16>
    %cst = arith.constant dense<0.000000e+00> : vector<8x128xf32>
    %4 = tpu.matmul %2, %3, %cst {dimension_numbers = #tpu.dot_dimension_numbers<[1], [1], [0], [0], [0, 0, 1, 0], [], []>} : vector<8x1024xbf16>, vector<128x1024xbf16>, vector<8x128xf32> -> vector<8x128xf32>
    %c0_3 = arith.constant 0 : index
    %c0_4 = arith.constant 0 : index
    %5 = vector.load %arg4[%c0_3, %c0_4] : memref<1x128xf32, #tpu.memory_space<vmem>>, vector<1x128xf32>
    %cst_5 = arith.constant 0.0441941731 : f32
    %6 = vector.broadcast %cst_5 : f32 to vector<8x128xf32>
    %7 = arith.mulf %4, %6 : vector<8x128xf32>
    %cst_6 = arith.constant 1.41421354 : f32
    %8 = vector.broadcast %cst_6 : f32 to vector<1x128xf32>
    %9 = arith.mulf %5, %8 : vector<1x128xf32>
    %10 = vector.broadcast %9 : vector<1x128xf32> to vector<8x128xf32>
    %11 = arith.addf %7, %10 : vector<8x128xf32>
    %cst_7 = arith.constant 0.000000e+00 : f32
    %12 = vector.broadcast %cst_7 : f32 to vector<8x128xf32>
    %13 = arith.cmpf oge, %11, %12 : vector<8x128xf32>
    %cst_8 = arith.constant 2.000000e-01 : f32
    %14 = vector.broadcast %cst_8 : f32 to vector<8x128xf32>
    %15 = arith.mulf %14, %11 : vector<8x128xf32>
    %16 = arith.select %13, %11, %15 : vector<8x128xi1>, vector<8x128xf32>
    %c0_9 = arith.constant 0 : index
    %c0_10 = arith.constant 0 : index
    %17 = vector.load %arg5[%c0_9, %c0_10] : memref<8x128xf32, #tpu.memory_space<vmem>>, vector<8x128xf32>
    tpu.vector_store %arg5[%c0_9, %c0_10], %16 {strides = array<i32>} : memref<8x128xf32, #tpu.memory_space<vmem>>, vector<8x128xf32>,
    return
  }
  func.func @transform_0(%arg0: i32, %arg1: i32) -> (i32, i32) {
    %c0_i32 = arith.constant 0 : i32
    %c0_i32_0 = arith.constant 0 : i32
    return %arg0, %c0_i32 : i32, i32
  }
  func.func @transform_1(%arg0: i32, %arg1: i32) -> (i32, i32) {
    %c0_i32 = arith.constant 0 : i32
    %c0_i32_0 = arith.constant 0 : i32
    return %arg1, %c0_i32 : i32, i32
  }
  func.func @transform_2(%arg0: i32, %arg1: i32) -> (i32, i32) {
    %c0_i32 = arith.constant 0 : i32
    %c0_i32_0 = arith.constant 0 : i32
    return %c0_i32, %arg1 : i32, i32
  }
  func.func @transform_3(%arg0: i32, %arg1: i32) -> (i32, i32) {
    %c0_i32 = arith.constant 0 : i32
    return %arg0, %arg1 : i32, i32
  }
}

</mosaic_0001>

<bundles_post_ra>
// kernel: tpu_custom_call.1
= control target key start
LH: loop header
LB: loop body
LE: loop exit
PB: predicated region body
PF: predicated region fallthrough
CT: control target
= control target key end

     0   :  { %s1306_s0 = inlined_call_operand.hbm [shape: f32[8,1024], index: 0, kind: input, shape index: {}]   ;;  %s1307_s1 = inlined_call_operand.hbm [shape: f32[256,1024], index: 1, kind: input, shape index: {}]   ;;  %s1308_s2 = inlined_call_operand.vmem [shape: f32[1,256], index: 2, kind: input, shape index: {}]   ;;  %s1309_s3 = inlined_call_operand.hbm [shape: f32[8,256], index: 3, kind: output, shape index: {}]  }
   0x1   :  { %1312 = sst [smem:[#allocation11_spill]] %s1306_s0 }
   0x2   :  { %8 = vsyncpa [#allocation3], 0 }
   0x3   :  { %9 = vsyncpa [#allocation6], 0 }
   0x4   :  { %11 = vsyncpa [#allocation6 + $0x1], 0 }
   0x5   :  { %12 = vsyncpa [#allocation4], 0 }
   0x6   :  { %14 = vsyncpa [#allocation4 + $0x1], 0  ;;  %s1001_s12 = smov 0   ;;  %s1003_s13 = smov 0  }
   0x7   :  { %s1005_s14 = smov 0   ;;  %s1007_s15 = smov 0  }
   0x8   :  { %s1009_s16 = smov 0   ;;  %s1011_s17 = smov 0  }
   0x9 LB: > { %s742_s18 = sadd.s32 4294967295, %s974_s17   ;;  %s743_s19 = sadd.s32 4294967294, %s974_s17   ;;  %s974_s17 = sphi %s1011_s17, %s20_s17   ;;  %s970_s16 = sphi %s1009_s16, %s1330_s16   ;;  %s966_s15 = sphi %s1007_s15, %s1329_s15   ;;  %s962_s14 = sphi %s1005_s14, %s1328_s14   ;;  %s958_s13 = sphi %s1003_s13, %s1327_s13   ;;  %s954_s12 = sphi %s1001_s12, %s1326_s12  }
   0xa   : > { %s65_s20 = sadd.s32 1, %s962_s14  ;;  %p72_p0 = scmp.ne.s32.totalorder %s962_s14, %s958_s13 }
   0xb   : > { %p73_p1 = scmp.eq.s32.totalorder %s974_s17, 0  ;;  %p78_p2 = scmp.ne.s32.totalorder %s958_s13, %s954_s12 }
   0xc   : > { %p1039_p3 = scmp.eq.s32.totalorder %s742_s18, 0  ;;  %p130_p4 = scmp.eq.s32.totalorder %s742_s18, 1 }
   0xd   : > { %p1043_p5 = por %p73_p1, %p72_p0  ;;  %p136_p6 = scmp.eq.s32.totalorder %s743_s19, 1 }
   0xe   : > { %p1049_p7 = por %p1039_p3, %p78_p2  ;;  %p1053_p8 = por %p130_p4, %p72_p0 }
   0xf   : > { %p1057_p9 = por %p136_p6, %p78_p2  ;;  %p744_p10 = scmp.ge.s32.totalorder %s974_s17, 1 }
  0x10   : > { %s1315_s23 = scalar_select %p1049_p7, 1, 0 }
  0x11   : > { %s1316_s24 = scalar_select %p1053_p8, 1, 0 }
  0x12   : > { %s1317_s25 = scalar_select %p1057_p9, 1, 0 }
  0x13   : > { %p143_p11 = scmp.lt.s32.totalorder %s974_s17, 3  ;;  %s976_s27 = smov [#allocation2]  }
  0x14   : > { %s159_s28 = sshll.u32 %s976_s27, 4  ;;  %p782_p1 = scmp.lt.s32.totalorder %s974_s17, 2  ;;  %s160_s28 = int_to_ptr.vmem [resolvable:$true] %s159_s28 }
  0x15   : > { %p1064_p13 = pnand %p744_p10, %p143_p11  ;;  %s29_s4 = sadd.s32 1, %s970_s16 }
  0x16   : > { %p1073_p4 = pnand %p782_p1, %p1043_p5  ;;  %p30_p6 = scmp.ge.s32.totalorder %s29_s4, 2 }
  0x17   : > { %p769_p0 = pneg %p1064_p13  ;;  %s170_s5 = sand.u32 1, %s962_s14  }
  0x18   : > { %s847_s6 = scalar_lea.vmem %s160_s28, 1024  ;;  %p855_p8 = scmp.lt.s32.totalorder %s160_s28, %s160_s28 }
  0x19   : > { %p1079_p2 = pnand %p769_p0, %p1039_p3  ;;  %p848_p11 = scmp.ne.s32.totalorder %s160_s28, %s847_s6 }
  0x1a   : > { %p856_p5 = scmp.lt.s32.totalorder %s847_s6, %s847_s6 }
  0x1b   : > { %p838_p10 = pneg %p1079_p2 }
  0x1c   : > { %p857_p1 = por %p856_p5, %p855_p8 }
  0x1d   : > { %p850_p12 = pnand %p848_p11, %p838_p10 }
  0x1f   : > { %p851_p9 = pneg %p850_p12 }
  0x21   : > { %p858_p7 = pnand %p857_p1, %p851_p9 }
  0x23   : > { %861 = shalt.err (!%p858_p7)
}
  0x24   : > { %s1321_s0 = sld [smem:[#allocation11_spill]]  ;;  %s1332_s4 = smov (%p30_p6, %s29_s4), 0 }
  0x25   : > { %s747_s9 = sshll.u32 %s170_s5, 10  ;;  %s62_s10 = ssub.s32 %s970_s16, %s1332_s4 }
  0x26   : > { %p63_p12 = scmp.eq.s32.totalorder %s62_s10, 0  ;;  %s760_s11 = sshll.u32 %s970_s16, 14 }
  0x27   : > { %s181_s22 = scalar_lea.hbm %s1307_s1, %s760_s11  ;;  %s174_s27 = scalar_lea.vmem [#allocation5], %s747_s9 }
  0x28   : > { %s182_s30 = sshll.u32 %s174_s27, 4  ;;  %s171_s7 = scalar_lea.sflag [#allocation6], %s170_s5  ;;  %s183_s30 = int_to_ptr.vmem [resolvable:$true] %s182_s30 }
  0x29   : > { %s1103_s6 = scalar_select %p63_p12, %s962_s14, %s65_s20  }
  0x2a   : > { %772 = dma.hbm_to_vmem [thread:$0]  (!%p1079_p2), %s1321_s0, 1024, %s160_s28, [#allocation3]  }
  0x2b   : > { %p864_p7 = pneg %p1073_p4  ;;  %s875_s28 = scalar_lea.vmem %s183_s30, 16384 }
  0x2c   : > { %p876_p8 = scmp.ne.s32.totalorder %s183_s30, %s875_s28  ;;  %s977_s8 = smov [#allocation5]  }
  0x2d   : > { %s880_s10 = sshll.u32 %s977_s8, 4  ;;  %s881_s10 = int_to_ptr.vmem [resolvable:$false] %s880_s10 }
  0x2e   : > { %p878_p9 = pnand %p876_p8, %p864_p7  ;;  %s882_s0 = scalar_lea.vmem %s881_s10, 32768 }
  0x2f   : > { %p883_p2 = scmp.lt.s32.totalorder %s183_s30, %s881_s10  ;;  %p884_p6 = scmp.lt.s32.totalorder %s882_s0, %s875_s28 }
  0x30   : > { %p879_p0 = pneg %p878_p9 }
  0x31   : > { %p885_p10 = por %p884_p6, %p883_p2 }
  0x33   : > { %p886_p11 = pnand %p885_p10, %p879_p0 }
  0x35   : > { %889 = shalt.err (!%p886_p11)
}
  0x36   : > { %s978_s9 = smov 1024   ;;  %s979_s20 = smov 64  }
  0x37   : > { %776 = dma.hbm_to_vmem [thread:$0]  (!%p1073_p4), %s181_s22, 16384, %s183_s30, %s171_s7, %s978_s9, %s978_s9, %s979_s20  }
  0x38   : > { %200 = sbr.rel (%p1064_p13) target bundleno = 415 (0x19f), region = 32 }
  0x3d   : > { %941 = dma.done.wait (%p1039_p3), [#allocation3], 1024  }
  0x3e   : > { %943 = vsyncadd (%p1039_p3), [#allocation3], 4294966272  ;;  %s1116_s0 = sand.u32 1, %s958_s13   ;;  %p1322_p4 = scmp.ne.s32.totalorder %s1315_s23, 0 }
  0x3f   : > { %s753_s5 = sshll.u32 %s1116_s0, 10  ;;  %s207_s11 = scalar_lea.sflag [#allocation6], %s1116_s0 }
  0x40   : > { %s1120_s18 = scalar_lea.vmem [#allocation5], %s753_s5 }
  0x41   : > { %945 = dma.done.wait (%p1322_p4), %s207_s11, 16384  }
  0x42   : > { %947 = vsyncadd (%p1322_p4), %s207_s11, 4294950912  ;;  %v362_v0 = vld [vmem:[%s1120_s18 + $0x388] sm:$0xff]  ;;  %v364_v2 = vld [vmem:[%s1120_s18 + $0x398] sm:$0xff]  ;;  %p237_p3 = scmp.lt.s32.totalorder %s966_s15, 1  ;;  %s754_s19 = sshll.u32 %s1116_s0, 3 }
  0x43   : > { %v370_v1 = vld [vmem:[%s1120_s18 + $0x3c8] sm:$0xff]  ;;  %v372_v4 = vld [vmem:[%s1120_s18 + $0x3d8] sm:$0xff]  ;;  %v361_v5 = vld [vmem:[%s1120_s18 + $0x380] sm:$0xff]  ;;  %s756_s22 = sshll.u32 %s966_s15, 7  ;;  %s235_s27 = scalar_lea.vmem [#allocation7], %s754_s19 }
  0x44   : > { %v442_v3 = vpack.c.bf16 %v370_v1, %v362_v0  ;;  %v369_v6 = vld [vmem:[%s1120_s18 + $0x3c0] sm:$0xff]  ;;  %v444_v7 = vpack.c.bf16 %v372_v4, %v364_v2  ;;  %v363_v9 = vld [vmem:[%s1120_s18 + $0x390] sm:$0xff]  ;;  %v346_v11 = vld [vmem:[%s1120_s18 + $0x308] sm:$0xff]  ;;  %s238_s21 = scalar_select %p237_p3, %s966_s15, 1 }
  0x45   : > { %v441_v8 = vpack.c.bf16 %v369_v6, %v361_v5  ;;  %v371_v10 = vld [vmem:[%s1120_s18 + $0x3d0] sm:$0xff]  ;;  %v354_v13 = vld [vmem:[%s1120_s18 + $0x348] sm:$0xff]  ;;  %v348_v14 = vld [vmem:[%s1120_s18 + $0x318] sm:$0xff]  ;;  %s639_s30 = sshll.u32 %s235_s27, 4  ;;  %s1264_s8 = scalar_lea.hbm %s1309_s3, %s756_s22  ;;  %s640_s30 = int_to_ptr.vmem [resolvable:$true] %s639_s30 }
  0x46   : > { %449 = vmatprep.subr.bf16.mxu0 %v442_v3  ;;  %v443_v12 = vpack.c.bf16 %v371_v10, %v363_v9  ;;  %v356_v15 = vld [vmem:[%s1120_s18 + $0x358] sm:$0xff]  ;;  %489 = vmatprep.subr.bf16.mxu1 %v444_v7  ;;  %v434_v16 = vpack.c.bf16 %v354_v13, %v346_v11  ;;  %v345_v18 = vld [vmem:[%s1120_s18 + $0x300] sm:$0xff]  ;;  %v347_v20 = vld [vmem:[%s1120_s18 + $0x310] sm:$0xff]  ;;  %s239_s29 = scalar_lea.vmem %s1308_s2, %s238_s21  ;;  %s624_s10 = scalar_lea.sflag [#allocation4], %s1116_s0 }
  0x47   : > { %450 = vmatpush1.bf16.xpose.msra.mxu0 %v441_v8  ;;  %v436_v17 = vpack.c.bf16 %v356_v15, %v348_v14  ;;  %v353_v19 = vld [vmem:[%s1120_s18 + $0x340] sm:$0xff]  ;;  %v355_v21 = vld [vmem:[%s1120_s18 + $0x350] sm:$0xff]  ;;  %v330_v22 = vld [vmem:[%s1120_s18 + $0x288] sm:$0xff]  ;;  %s890_s9 = scalar_lea.vmem %s640_s30, 128  ;;  %p1323_p5 = scmp.ne.s32.totalorder %s1316_s24, 0 }
  0x48   : > { %490 = vmatpush1.bf16.xpose.msra.mxu1 %v443_v12  ;;  %451 = vmatprep.subr.bf16.mxu0 %v434_v16  ;;  %v338_v23 = vld [vmem:[%s1120_s18 + $0x2c8] sm:$0xff]  ;;  %v332_v24 = vld [vmem:[%s1120_s18 + $0x298] sm:$0xff]  ;;  %v433_v26 = vpack.c.bf16 %v353_v19, %v345_v18  ;;  %v435_v27 = vpack.c.bf16 %v355_v21, %v347_v20  ;;  %v329_v30 = vld [vmem:[%s1120_s18 + $0x280] sm:$0xff]  ;;  %p891_p13 = scmp.ne.s32.totalorder %s640_s30, %s890_s9  ;;  %s980_s20 = smov [#allocation7]  }
  0x49   : > { %491 = vmatprep.subr.bf16.mxu1 %v436_v17  ;;  %v340_v25 = vld [vmem:[%s1120_s18 + $0x2d8] sm:$0xff]  ;;  %v426_v28 = vpack.c.bf16 %v338_v23, %v330_v22  ;;  %v337_v31 = vld [vmem:[%s1120_s18 + $0x2c0] sm:$0xff]  ;;  %v331_v32 = vld [vmem:[%s1120_s18 + $0x290] sm:$0xff]  ;;  %s894_s15 = sshll.u32 %s980_s20, 4  ;;  %s895_s15 = int_to_ptr.vmem [resolvable:$false] %s894_s15 }
  0x4a   : > { %v428_v29 = vpack.c.bf16 %v340_v25, %v332_v24  ;;  %v339_v33 = vld [vmem:[%s1120_s18 + $0x2d0] sm:$0xff]  ;;  %v314_v34 = vld [vmem:[%s1120_s18 + $0x208] sm:$0xff]  ;;  %v316_v36 = vld [vmem:[%s1120_s18 + $0x218] sm:$0xff]  ;;  %v425_v38 = vpack.c.bf16 %v337_v31, %v329_v30  ;;  %p892_p1 = pnand %p891_p13, %p1323_p5  ;;  %s896_s5 = scalar_lea.vmem %s895_s15, 256 }
  0x4b   : > { %v322_v35 = vld [vmem:[%s1120_s18 + $0x248] sm:$0xff]  ;;  %v324_v37 = vld [vmem:[%s1120_s18 + $0x258] sm:$0xff]  ;;  %v427_v39 = vpack.c.bf16 %v339_v33, %v331_v32  ;;  %v313_v42 = vld [vmem:[%s1120_s18 + $0x200] sm:$0xff]  ;;  %p897_p7 = scmp.lt.s32.totalorder %s640_s30, %s895_s15  ;;  %p898_p8 = scmp.lt.s32.totalorder %s896_s5, %s890_s9 }
  0x4c   : > { %v418_v40 = vpack.c.bf16 %v322_v35, %v314_v34  ;;  %v420_v41 = vpack.c.bf16 %v324_v37, %v316_v36  ;;  %v321_v43 = vld [vmem:[%s1120_s18 + $0x240] sm:$0xff]  ;;  %v315_v44 = vld [vmem:[%s1120_s18 + $0x210] sm:$0xff]  ;;  %v242_v45 = vld [vmem:[#allocation2 + $0x8] sm:$0xff]  ;;  %p893_p12 = pneg %p892_p1 }
  0x4d   : > { %v244_v46 = vld [vmem:[#allocation2 + $0x18] sm:$0xff]  ;;  %v323_v47 = vld [vmem:[%s1120_s18 + $0x250] sm:$0xff]  ;;  %v298_v48 = vld [vmem:[%s1120_s18 + $0x188] sm:$0xff]  ;;  %v378_v50 = vpack.c.bf16 %v242_v45, %v242_v45  ;;  %v417_v54 = vpack.c.bf16 %v321_v43, %v313_v42  ;;  %p899_p9 = por %p898_p8, %p897_p7 }
  0x4e   : > { %v306_v49 = vld [vmem:[%s1120_s18 + $0x1c8] sm:$0xff]  ;;  %v380_v51 = vpack.c.bf16 %v244_v46, %v244_v46  ;;  %v300_v52 = vld [vmem:[%s1120_s18 + $0x198] sm:$0xff]  ;;  %v419_v55 = vpack.c.bf16 %v323_v47, %v315_v44  ;;  %v297_v58 = vld [vmem:[%s1120_s18 + $0x180] sm:$0xff] }
  0x4f   : > { %452 = vmatpush1.bf16.xpose.msra.mxu0 %v433_v26  ;;  %v308_v53 = vld [vmem:[%s1120_s18 + $0x1d8] sm:$0xff]  ;;  %481 = vmatprep.mubr.bf16.mxu0 %v378_v50  ;;  %v410_v56 = vpack.c.bf16 %v306_v49, %v298_v48  ;;  %v305_v59 = vld [vmem:[%s1120_s18 + $0x1c0] sm:$0xff]  ;;  %v299_v60 = vld [vmem:[%s1120_s18 + $0x190] sm:$0xff]  ;;  %p900_p0 = pnand %p899_p9, %p893_p12 }
  0x50   : > { %492 = vmatpush1.bf16.xpose.msra.mxu1 %v435_v27  ;;  %453 = vmatprep.subr.bf16.mxu0 %v426_v28  ;;  %v412_v57 = vpack.c.bf16 %v308_v53, %v300_v52  ;;  %v307_v61 = vld [vmem:[%s1120_s18 + $0x1d0] sm:$0xff]  ;;  %v282_v62 = vld [vmem:[%s1120_s18 + $0x108] sm:$0xff]  ;;  %v284_v0 = vld [vmem:[%s1120_s18 + $0x118] sm:$0xff]  ;;  %v409_v2 = vpack.c.bf16 %v305_v59, %v297_v58 }
  0x51   : > { %493 = vmatprep.subr.bf16.mxu1 %v428_v29  ;;  %521 = vmatprep.mubr.bf16.mxu1 %v380_v51  ;;  %v290_v63 = vld [vmem:[%s1120_s18 + $0x148] sm:$0xff]  ;;  %v292_v1 = vld [vmem:[%s1120_s18 + $0x158] sm:$0xff]  ;;  %v411_v3 = vpack.c.bf16 %v307_v61, %v299_v60  ;;  %v281_v6 = vld [vmem:[%s1120_s18 + $0x100] sm:$0xff] }
  0x52   : > { %v402_v4 = vpack.c.bf16 %v290_v63, %v282_v62  ;;  %v404_v5 = vpack.c.bf16 %v292_v1, %v284_v0  ;;  %v289_v7 = vld [vmem:[%s1120_s18 + $0x140] sm:$0xff]  ;;  %v283_v8 = vld [vmem:[%s1120_s18 + $0x110] sm:$0xff]  ;;  %v266_v10 = vld [vmem:[%s1120_s18 + $0x88] sm:$0xff] }
  0x53   : > { %v291_v9 = vld [vmem:[%s1120_s18 + $0x150] sm:$0xff]  ;;  %v274_v11 = vld [vmem:[%s1120_s18 + $0xc8] sm:$0xff]  ;;  %v268_v12 = vld [vmem:[%s1120_s18 + $0x98] sm:$0xff]  ;;  %v401_v14 = vpack.c.bf16 %v289_v7, %v281_v6 }
  0x54   : > { %v276_v13 = vld [vmem:[%s1120_s18 + $0xd8] sm:$0xff]  ;;  %v403_v15 = vpack.c.bf16 %v291_v9, %v283_v8  ;;  %v394_v16 = vpack.c.bf16 %v274_v11, %v266_v10  ;;  %v265_v18 = vld [vmem:[%s1120_s18 + $0x80] sm:$0xff]  ;;  %v267_v20 = vld [vmem:[%s1120_s18 + $0x90] sm:$0xff] }
  0x55   : > { %v396_v17 = vpack.c.bf16 %v276_v13, %v268_v12  ;;  %v273_v19 = vld [vmem:[%s1120_s18 + $0xc0] sm:$0xff]  ;;  %v275_v21 = vld [vmem:[%s1120_s18 + $0xd0] sm:$0xff]  ;;  %v250_v22 = vld [vmem:[%s1120_s18 + $0x8] sm:$0xff] }
  0x56   : > { %v258_v23 = vld [vmem:[%s1120_s18 + $0x48] sm:$0xff]  ;;  %v252_v24 = vld [vmem:[%s1120_s18 + $0x18] sm:$0xff]  ;;  %v393_v26 = vpack.c.bf16 %v273_v19, %v265_v18  ;;  %v395_v27 = vpack.c.bf16 %v275_v21, %v267_v20  ;;  %v249_v30 = vld [vmem:[%s1120_s18] sm:$0xff] }
  0x57   : > { %454 = vmatpush1.bf16.xpose.msra.mxu0 %v425_v38  ;;  %v260_v25 = vld [vmem:[%s1120_s18 + $0x58] sm:$0xff]  ;;  %v386_v28 = vpack.c.bf16 %v258_v23, %v250_v22  ;;  %v257_v31 = vld [vmem:[%s1120_s18 + $0x40] sm:$0xff]  ;;  %v251_v32 = vld [vmem:[%s1120_s18 + $0x10] sm:$0xff] }
  0x58   : > { %494 = vmatpush1.bf16.xpose.msra.mxu1 %v427_v39  ;;  %455 = vmatprep.subr.bf16.mxu0 %v418_v40  ;;  %v388_v29 = vpack.c.bf16 %v260_v25, %v252_v24  ;;  %v259_v33 = vld [vmem:[%s1120_s18 + $0x50] sm:$0xff]  ;;  %v366_v34 = vld [vmem:[%s1120_s18 + $0x3a8] sm:$0xff]  ;;  %v368_v36 = vld [vmem:[%s1120_s18 + $0x3b8] sm:$0xff]  ;;  %v385_v38 = vpack.c.bf16 %v257_v31, %v249_v30 }
  0x59   : > { %495 = vmatprep.subr.bf16.mxu1 %v420_v41  ;;  %v374_v35 = vld [vmem:[%s1120_s18 + $0x3e8] sm:$0xff]  ;;  %v376_v37 = vld [vmem:[%s1120_s18 + $0x3f8] sm:$0xff]  ;;  %v387_v39 = vpack.c.bf16 %v259_v33, %v251_v32  ;;  %v241_v42 = vld [vmem:[#allocation2] sm:$0xff] }
  0x5a   : > { %v446_v40 = vpack.c.bf16 %v374_v35, %v366_v34  ;;  %v448_v41 = vpack.c.bf16 %v376_v37, %v368_v36  ;;  %v243_v43 = vld [vmem:[#allocation2 + $0x10] sm:$0xff]  ;;  %v365_v44 = vld [vmem:[%s1120_s18 + $0x3a0] sm:$0xff]  ;;  %v350_v48 = vld [vmem:[%s1120_s18 + $0x328] sm:$0xff]  ;;  %v377_v50 = vpack.c.bf16 %v241_v42, %v241_v42 }
  0x5b   : > { %v373_v45 = vld [vmem:[%s1120_s18 + $0x3e0] sm:$0xff]  ;;  %v367_v46 = vld [vmem:[%s1120_s18 + $0x3b0] sm:$0xff]  ;;  %v358_v49 = vld [vmem:[%s1120_s18 + $0x368] sm:$0xff] }
  0x5c   : > { %v375_v47 = vld [vmem:[%s1120_s18 + $0x3f0] sm:$0xff]  ;;  %v352_v51 = vld [vmem:[%s1120_s18 + $0x338] sm:$0xff]  ;;  %v246_v53 = vld [vmem:[#allocation2 + $0x28] sm:$0xff]  ;;  %v438_v58 = vpack.c.bf16 %v358_v49, %v350_v48 }
  0x5d   : > { %v360_v52 = vld [vmem:[%s1120_s18 + $0x378] sm:$0xff]  ;;  %v382_v60 = vpack.c.bf16 %v246_v53, %v246_v53  ;;  %v349_v62 = vld [vmem:[%s1120_s18 + $0x320] sm:$0xff]  ;;  %v351_v0 = vld [vmem:[%s1120_s18 + $0x330] sm:$0xff] }
  0x5e   : > { %v440_v59 = vpack.c.bf16 %v360_v52, %v352_v51  ;;  %v357_v63 = vld [vmem:[%s1120_s18 + $0x360] sm:$0xff]  ;;  %v359_v1 = vld [vmem:[%s1120_s18 + $0x370] sm:$0xff]  ;;  %v278_v51 = vld [vmem:[%s1120_s18 + $0xe8] sm:$0xff] }
  0x5f   : > { %456 = vmatpush1.bf16.xpose.msra.mxu0 %v417_v54  ;;  %v379_v54 = vpack.c.bf16 %v243_v43, %v243_v43  ;;  %v437_v6 = vpack.c.bf16 %v357_v63, %v349_v62  ;;  %v439_v7 = vpack.c.bf16 %v359_v1, %v351_v0  ;;  %v333_v10 = vld [vmem:[%s1120_s18 + $0x2a0] sm:$0xff]  ;;  %v335_v12 = vld [vmem:[%s1120_s18 + $0x2b0] sm:$0xff]  ;;  %v272_v52 = vld [vmem:[%s1120_s18 + $0xb8] sm:$0xff] }
  0x60   : > { %496 = vmatpush1.bf16.xpose.msra.mxu1 %v419_v55  ;;  %457 = vmatprep.subr.bf16.mxu0 %v410_v56  ;;  %v445_v55 = vpack.c.bf16 %v373_v45, %v365_v44  ;;  %v248_v56 = vld [vmem:[#allocation2 + $0x38] sm:$0xff]  ;;  %v341_v11 = vld [vmem:[%s1120_s18 + $0x2e0] sm:$0xff]  ;;  %v343_v13 = vld [vmem:[%s1120_s18 + $0x2f0] sm:$0xff] }
  0x61   : > { %497 = vmatprep.subr.bf16.mxu1 %v412_v57  ;;  %v447_v57 = vpack.c.bf16 %v375_v47, %v367_v46  ;;  %v384_v61 = vpack.c.bf16 %v248_v56, %v248_v56  ;;  %v429_v18 = vpack.c.bf16 %v341_v11, %v333_v10  ;;  %v431_v19 = vpack.c.bf16 %v343_v13, %v335_v12  ;;  %v317_v22 = vld [vmem:[%s1120_s18 + $0x220] sm:$0xff]  ;;  %v319_v24 = vld [vmem:[%s1120_s18 + $0x230] sm:$0xff]  ;;  %v280_v53 = vld [vmem:[%s1120_s18 + $0xf8] sm:$0xff] }
  0x62   : > { %v325_v23 = vld [vmem:[%s1120_s18 + $0x260] sm:$0xff]  ;;  %v327_v25 = vld [vmem:[%s1120_s18 + $0x270] sm:$0xff]  ;;  %v254_v62 = vld [vmem:[%s1120_s18 + $0x28] sm:$0xff] }
  0x63   : > { %v421_v30 = vpack.c.bf16 %v325_v23, %v317_v22  ;;  %v423_v31 = vpack.c.bf16 %v327_v25, %v319_v24  ;;  %v301_v34 = vld [vmem:[%s1120_s18 + $0x1a0] sm:$0xff]  ;;  %v303_v36 = vld [vmem:[%s1120_s18 + $0x1b0] sm:$0xff]  ;;  %v262_v63 = vld [vmem:[%s1120_s18 + $0x68] sm:$0xff]  ;;  %v613_v24 = vlaneseq }
  0x64   : > { %v309_v35 = vld [vmem:[%s1120_s18 + $0x1e0] sm:$0xff]  ;;  %v311_v37 = vld [vmem:[%s1120_s18 + $0x1f0] sm:$0xff]  ;;  %v256_v0 = vld [vmem:[%s1120_s18 + $0x38] sm:$0xff] }
  0x65   : > { %v413_v42 = vpack.c.bf16 %v309_v35, %v301_v34  ;;  %v415_v43 = vpack.c.bf16 %v311_v37, %v303_v36  ;;  %v285_v46 = vld [vmem:[%s1120_s18 + $0x120] sm:$0xff]  ;;  %v287_v48 = vld [vmem:[%s1120_s18 + $0x130] sm:$0xff]  ;;  %v264_v1 = vld [vmem:[%s1120_s18 + $0x78] sm:$0xff]  ;;  %v614_v25 = vshrl.u32 %v613_v24, 7 }
  0x66   : > { %v293_v47 = vld [vmem:[%s1120_s18 + $0x160] sm:$0xff]  ;;  %v295_v49 = vld [vmem:[%s1120_s18 + $0x170] sm:$0xff] }
  0x67   : > { %458 = vmatpush1.bf16.xpose.msra.mxu0 %v409_v2  ;;  %v334_v2 = vld [vmem:[%s1120_s18 + $0x2a8] sm:$0xff]  ;;  %v245_v12 = vld [vmem:[#allocation2 + $0x20] sm:$0xff]  ;;  %v247_v13 = vld [vmem:[#allocation2 + $0x30] sm:$0xff] }
  0x68   : > { %498 = vmatpush1.bf16.xpose.msra.mxu1 %v411_v3  ;;  %459 = vmatprep.subr.bf16.mxu0 %v402_v4  ;;  %v342_v3 = vld [vmem:[%s1120_s18 + $0x2e8] sm:$0xff]  ;;  %v336_v4 = vld [vmem:[%s1120_s18 + $0x2b8] sm:$0xff] }
  0x69   : > { %499 = vmatprep.subr.bf16.mxu1 %v404_v5  ;;  %v344_v5 = vld [vmem:[%s1120_s18 + $0x2f8] sm:$0xff]  ;;  %v430_v8 = vpack.c.bf16 %v342_v3, %v334_v2 }
  0x6a   : > { %v432_v9 = vpack.c.bf16 %v344_v5, %v336_v4  ;;  %v390_v4 = vpack.c.bf16 %v262_v63, %v254_v62  ;;  %v392_v5 = vpack.c.bf16 %v264_v1, %v256_v0 }
  0x6f   : > { %460 = vmatpush1.bf16.xpose.msra.mxu0 %v401_v14  ;;  %v318_v14 = vld [vmem:[%s1120_s18 + $0x228] sm:$0xff] }
  0x70   : > { %500 = vmatpush1.bf16.xpose.msra.mxu1 %v403_v15  ;;  %461 = vmatprep.subr.bf16.mxu0 %v394_v16  ;;  %v326_v15 = vld [vmem:[%s1120_s18 + $0x268] sm:$0xff]  ;;  %v320_v16 = vld [vmem:[%s1120_s18 + $0x238] sm:$0xff] }
  0x71   : > { %501 = vmatprep.subr.bf16.mxu1 %v396_v17  ;;  %v328_v17 = vld [vmem:[%s1120_s18 + $0x278] sm:$0xff]  ;;  %v422_v20 = vpack.c.bf16 %v326_v15, %v318_v14  ;;  %v381_v14 = vpack.c.bf16 %v245_v12, %v245_v12  ;;  %v383_v15 = vpack.c.bf16 %v247_v13, %v247_v13 }
  0x72   : > { %v424_v21 = vpack.c.bf16 %v328_v17, %v320_v16 }
  0x77   : > { %462 = vmatpush1.bf16.xpose.msra.mxu0 %v393_v26  ;;  %v302_v26 = vld [vmem:[%s1120_s18 + $0x1a8] sm:$0xff] }
  0x78   : > { %502 = vmatpush1.bf16.xpose.msra.mxu1 %v395_v27  ;;  %463 = vmatprep.subr.bf16.mxu0 %v386_v28  ;;  %v310_v27 = vld [vmem:[%s1120_s18 + $0x1e8] sm:$0xff]  ;;  %v304_v28 = vld [vmem:[%s1120_s18 + $0x1b8] sm:$0xff] }
  0x79   : > { %503 = vmatprep.subr.bf16.mxu1 %v388_v29  ;;  %v312_v29 = vld [vmem:[%s1120_s18 + $0x1f8] sm:$0xff]  ;;  %v414_v32 = vpack.c.bf16 %v310_v27, %v302_v26  ;;  %v609_v26 = vld [vmem:[%s239_s29] sm:$0x1] }
  0x7a   : > { %v416_v33 = vpack.c.bf16 %v312_v29, %v304_v28  ;;  %v611_v28 = vmul.f32 1.4142135, %v609_v26  ;;  %v615_v29 = vsub.s32 0, %v614_v25 }
  0x7c   : > { %v616_v35 = vrot.slane %v611_v28, %v615_v29 }
  0x7f   : > { %464 = vmatpush1.bf16.xpose.msra.mxu0 %v385_v38  ;;  %v286_v38 = vld [vmem:[%s1120_s18 + $0x128] sm:$0xff] }
  0x80   : > { %504 = vmatpush1.bf16.xpose.msra.mxu1 %v387_v39  ;;  %529 = vmatprep.subr.bf16.mxu0 %v446_v40  ;;  %v294_v39 = vld [vmem:[%s1120_s18 + $0x168] sm:$0xff]  ;;  %v288_v40 = vld [vmem:[%s1120_s18 + $0x138] sm:$0xff] }
  0x81   : > { %569 = vmatprep.subr.bf16.mxu1 %v448_v41  ;;  %v296_v41 = vld [vmem:[%s1120_s18 + $0x178] sm:$0xff]  ;;  %v406_v44 = vpack.c.bf16 %v294_v39, %v286_v38 }
  0x82   : > { %v408_v45 = vpack.c.bf16 %v296_v41, %v288_v40 }
  0x86   : > { %482 = vmatmul.mubr.bf16.vlgmr.msra.gmra.mxu0 %v377_v50  ;;  %v270_v50 = vld [vmem:[%s1120_s18 + $0xa8] sm:$0xff] }
  0x87   : > { %522 = vmatmul.mubr.bf16.vlgmr.msra.gmra.mxu1 %v379_v54  ;;  %530 = vmatpush1.bf16.xpose.msra.mxu0 %v445_v55  ;;  %v405_v54 = vpack.c.bf16 %v293_v47, %v285_v46  ;;  %v407_v55 = vpack.c.bf16 %v295_v49, %v287_v48  ;;  %v398_v56 = vpack.c.bf16 %v278_v51, %v270_v50 }
  0x88   : > { %570 = vmatpush1.bf16.xpose.msra.mxu1 %v447_v57  ;;  %531 = vmatprep.subr.bf16.mxu0 %v438_v58  ;;  %v400_v57 = vpack.c.bf16 %v280_v53, %v272_v52  ;;  %v269_v58 = vld [vmem:[%s1120_s18 + $0xa0] sm:$0xff] }
  0x89   : > { %571 = vmatprep.subr.bf16.mxu1 %v440_v59  ;;  %561 = vmatprep.mubr.bf16.mxu0 %v382_v60  ;;  %v277_v59 = vld [vmem:[%s1120_s18 + $0xe0] sm:$0xff]  ;;  %v271_v60 = vld [vmem:[%s1120_s18 + $0xb0] sm:$0xff] }
  0x8a   : > { %601 = vmatprep.mubr.bf16.mxu1 %v384_v61  ;;  %v279_v61 = vld [vmem:[%s1120_s18 + $0xf0] sm:$0xff]  ;;  %v397_v2 = vpack.c.bf16 %v277_v59, %v269_v58 }
  0x8b   : > { %v399_v3 = vpack.c.bf16 %v279_v61, %v271_v60 }
  0x8f   : > { %532 = vmatpush1.bf16.xpose.msra.mxu0 %v437_v6  ;;  %v253_v6 = vld [vmem:[%s1120_s18 + $0x20] sm:$0xff] }
  0x90   : > { %572 = vmatpush1.bf16.xpose.msra.mxu1 %v439_v7  ;;  %533 = vmatprep.subr.bf16.mxu0 %v430_v8  ;;  %v261_v7 = vld [vmem:[%s1120_s18 + $0x60] sm:$0xff]  ;;  %v255_v8 = vld [vmem:[%s1120_s18 + $0x30] sm:$0xff] }
  0x91   : > { %573 = vmatprep.subr.bf16.mxu1 %v432_v9  ;;  %v263_v9 = vld [vmem:[%s1120_s18 + $0x70] sm:$0xff]  ;;  %v389_v10 = vpack.c.bf16 %v261_v7, %v253_v6 }
  0x92   : > { %v391_v11 = vpack.c.bf16 %v263_v9, %v255_v8 }
  0x97   : > { %534 = vmatpush1.bf16.xpose.msra.mxu0 %v429_v18 }
  0x98   : > { %574 = vmatpush1.bf16.xpose.msra.mxu1 %v431_v19  ;;  %535 = vmatprep.subr.bf16.mxu0 %v422_v20 }
  0x99   : > { %575 = vmatprep.subr.bf16.mxu1 %v424_v21 }
  0x9f   : > { %536 = vmatpush1.bf16.xpose.msra.mxu0 %v421_v30 }
  0xa0   : > { %576 = vmatpush1.bf16.xpose.msra.mxu1 %v423_v31  ;;  %537 = vmatprep.subr.bf16.mxu0 %v414_v32 }
  0xa1   : > { %577 = vmatprep.subr.bf16.mxu1 %v416_v33 }
  0xa7   : > { %538 = vmatpush1.bf16.xpose.msra.mxu0 %v413_v42 }
  0xa8   : > { %578 = vmatpush1.bf16.xpose.msra.mxu1 %v415_v43  ;;  %539 = vmatprep.subr.bf16.mxu0 %v406_v44 }
  0xa9   : > { %579 = vmatprep.subr.bf16.mxu1 %v408_v45 }
  0xaf   : > { %540 = vmatpush1.bf16.xpose.msra.mxu0 %v405_v54 }
  0xb0   : > { %580 = vmatpush1.bf16.xpose.msra.mxu1 %v407_v55  ;;  %541 = vmatprep.subr.bf16.mxu0 %v398_v56 }
  0xb1   : > { %581 = vmatprep.subr.bf16.mxu1 %v400_v57 }
  0xb7   : > { %542 = vmatpush1.bf16.xpose.msra.mxu0 %v397_v2 }
  0xb8   : > { %582 = vmatpush1.bf16.xpose.msra.mxu1 %v399_v3  ;;  %543 = vmatprep.subr.bf16.mxu0 %v390_v4 }
  0xb9   : > { %583 = vmatprep.subr.bf16.mxu1 %v392_v5 }
  0xbf   : > { %544 = vmatpush1.bf16.xpose.msra.mxu0 %v389_v10 }
  0xc0   : > { %584 = vmatpush1.bf16.xpose.msra.mxu1 %v391_v11 }
  0xc6   : > { %562 = vmatmul.mubr.bf16.vlgmr.msra.gmra.mxu0 %v381_v14 }
  0xc7   : > { %602 = vmatmul.mubr.bf16.vlgmr.msra.gmra.mxu1 %v383_v15 }
 0x146   : > { %v483_v16 = vpop.f32.mrf.mxu0 }
 0x147   : > { %v523_v17 = vpop.f32.mrf.mxu1 }
 0x148   : > { %v485_v18 = vpop.f32.mrf.mxu0  ;;  %v524_v27 = vadd.f32 %v523_v17, %v483_v16 }
 0x149   : > { %v525_v19 = vpop.f32.mrf.mxu1 }
 0x14a   : > { %v486_v20 = vpop.f32.mrf.mxu0 }
 0x14b   : > { %v526_v21 = vpop.f32.mrf.mxu1 }
 0x14c   : > { %v487_v22 = vpop.f32.mrf.mxu0 }
 0x14d   : > { %v527_v23 = vpop.f32.mrf.mxu1 }
 0x186   : > { %v563_v30 = vpop.f32.mrf.mxu0 }
 0x187   : > { %v564_v31 = vadd.f32 %v563_v30, %v524_v27  ;;  %v603_v32 = vpop.f32.mrf.mxu1 }
 0x188   : > { %v565_v33 = vpop.f32.mrf.mxu0 }
 0x189   : > { %v604_v34 = vadd.f32 %v603_v32, %v564_v31  ;;  %v605_v36 = vpop.f32.mrf.mxu1 }
 0x18a   : > { %v566_v37 = vpop.f32.mrf.mxu0 }
 0x18b   : > { %v610_v38 = vmul.f32 0.044194173, %v604_v34  ;;  %v606_v39 = vpop.f32.mrf.mxu1 }
 0x18c   : > { %v567_v40 = vpop.f32.mrf.mxu0 }
 0x18d   : > { %v618_v41 = vadd.f32 %v616_v35, %v610_v38  ;;  %v607_v42 = vpop.f32.mrf.mxu1 }
 0x18f   : > { %vm619_vm0 = vcmp.ge.f32.partialorder %v618_v41, 0.0  ;;  %v620_v43 = vmul.f32 0.2, %v618_v41 }
 0x191   : > { %v621_v44 = vsel %vm619_vm0, %v618_v41, %v620_v43 }
 0x192   : > { %622 = vst [vmem:[%s235_s27] sm:$0xff] %v621_v44 }
 0x193   : > { %903 = shalt.err (!%p900_p0)
}
 0x194   : > { %s904_s11 = scalar_lea.hbm %s1264_s8, 128  ;;  %s908_s21 = scalar_lea.hbm %s1309_s3, 256 }
 0x195   : > { %p905_p2 = scmp.ne.s32.totalorder %s1264_s8, %s904_s11  ;;  %p909_p11 = scmp.lt.s32.totalorder %s1264_s8, %s1309_s3 }
 0x196   : > { %p910_p4 = scmp.lt.s32.totalorder %s908_s21, %s904_s11 }
 0x197   : > { %p906_p6 = pnand %p905_p2, %p1323_p5 }
 0x198   : > { %p911_p3 = por %p910_p4, %p909_p11 }
 0x199   : > { %p907_p10 = pneg %p906_p6 }
 0x19b   : > { %p912_p13 = pnand %p911_p3, %p907_p10 }
 0x19d   : > { %915 = shalt.err (!%p912_p13)
}
 0x19e   : > { %767 = dma.vmem_to_hbm [thread:$0]  (%p1323_p5), %s640_s30, 128, %s1264_s8, %s624_s10  }
 0x19f PF: > { %s651_s29 = sand.u32 1, %s954_s12   ;;  %p1324_p1 = scmp.ne.s32.totalorder %s1317_s25, 0 }
 0x1a0   : > { %p1325_p12 = scmp.ge.s32.totalorder %s974_s17, 2  ;;  %s652_s19 = scalar_lea.sflag [#allocation4], %s651_s29 }
 0x1a2   : > { %p778_p7 = pnand %p1325_p12, %p1324_p1 }
 0x1a4   : > { %p779_p8 = pneg %p778_p7 }
 0x1a6   : > { %949 = dma.done.wait (%p779_p8), %s652_s19, 128  }
 0x1a7   : > { %951 = vsyncadd (%p779_p8), %s652_s19, 4294967168  ;;  %s20_s17 = sadd.s32 1, %s974_s17   ;;  %s1326_s12 = smov %s958_s13 }
 0x1a8   : > { %p17_p9 = scmp.ge.s32.totalorder %s20_s17, 4   ;;  %s1327_s13 = smov %s962_s14 }
 0x1a9   : > { %s1328_s14 = smov %s1103_s6  ;;  %s1329_s15 = smov %s970_s16 }
 0x1aa   : > { %s1330_s16 = smov %s1332_s4  ;;  %19 = sbr.rel (!%p17_p9) target bundleno = 9 (0x9), region = 86 }
 0x1af   :  { %657 = vsyncpa [#allocation3], 1 }
 0x1b0   :  { %659 = vsyncpa [#allocation3 + $0x1], 1 }
 0x1b1   :  { %660 = vsyncpa [#allocation6], 1 }
 0x1b2   :  { %662 = vsyncpa [#allocation6 + $0x1], 1 }
 0x1b3   :  { %663 = vsyncpa [#allocation4], 1 }
 0x1b4   :  { %665 = vsyncpa [#allocation4 + $0x1], 1 }

</bundles_post_ra>
